<compile_context>
chip_gen: v6e
topology: v6e:2x2x1
jax: 0.10.0
libtpu: 0.0.40
codegen_flags: <defaults>
</compile_context>

<pallas_src>
import functools

import jax
import jax.numpy as jnp
from jax import lax
from jax.experimental import pallas as pl
from jax.experimental.pallas import tpu as pltpu


def _round_up(n, m):
    return -(-n // m) * m


# ---------------------------------------------------------------------------
# Stage 1: global average pool, tiled over (B*C rows, H*W chunks).
# ---------------------------------------------------------------------------
def _pool_mean_kernel(x_ref, o_ref, acc_ref, *, hw, hw_chunk, acc_w, inv_hw,
                      mask_tail):
    # x_ref:   (rows_blk, hw_chunk)   native dtype
    # o_ref:   (rows_blk, 1)          f32, resident across the chunk axis
    # acc_ref: (rows_blk, acc_w)      f32 lane-dense accumulator (VMEM scratch)
    k = pl.program_id(1)

    @pl.when(k == 0)
    def _init():
        acc_ref[...] = jnp.zeros_like(acc_ref)

    # Upcast only after the VMEM load (no f32 copy of x in HBM).
    x = x_ref[...].astype(jnp.float32)

    if mask_tail:
        # Zero the out-of-range columns of the (padded) last chunk.  Pallas
        # pads partial blocks with undefined data, so this mask is mandatory.
        col = k * hw_chunk + lax.broadcasted_iota(jnp.int32, x.shape, 1)
        x = jnp.where(col < hw, x, 0.0)

    # Lane-wise (VPU-only) fold of the lane groups into a 128-wide partial;
    # static, lane-aligned slices -> pure vreg selection, no XLU traffic.
    partial = x[:, 0:acc_w]
    for start in range(acc_w, hw_chunk, acc_w):
        partial = partial + x[:, start:start + acc_w]
    acc_ref[...] += partial

    @pl.when(k == pl.num_programs(1) - 1)
    def _finalize():
        # Single cross-lane reduce (XLU) + one multiply by the precomputed
        # reciprocal of the *true* H*W, then the only width-1 store.
        o_ref[...] = jnp.sum(acc_ref[...], axis=-1, keepdims=True) * inv_hw


# ---------------------------------------------------------------------------
# Stage 2: fc1 (1x1 conv == linear) + ReLU + fc2 + softmax.  Tiny, one-shot.
# ---------------------------------------------------------------------------
def _fc_softmax_kernel(p_ref, w1_ref, b1_ref, w2_ref, b2_ref, o_ref):
    # p_ref: (B, C) pooled means f32; w1: (C, K); b1: (1, K); w2: (K, K); b2: (1, K)
    pooled = p_ref[...]
    h = jnp.dot(pooled, w1_ref[...], preferred_element_type=jnp.float32) + b1_ref[...]
    h = jnp.maximum(h, 0.0)
    logits = jnp.dot(h, w2_ref[...], preferred_element_type=jnp.float32) + b2_ref[...]
    m = jnp.max(logits, axis=-1, keepdims=True)
    e = jnp.exp(logits - m)
    # Exact division: runs once per forward, off the hot path.
    o_ref[...] = e / jnp.sum(e, axis=-1, keepdims=True)


# ---------------------------------------------------------------------------
# Per-generation tiling budgets.
# ---------------------------------------------------------------------------
def _device_budgets():
    """Returns (per-input-buffer budget bytes, explicit scoped-VMEM limit bytes)."""
    try:
        kind = jax.devices()[0].device_kind.lower()
    except Exception:  # pragma: no cover - defensive
        kind = ""
    if "v7" in kind or "7x" in kind:
        # 64 MiB physical / TC, 3.2 TB/s: big tiles amortize per-step overhead.
        return 14 << 20, 48 << 20
    if "v6" in kind:
        # 128 MiB physical, 32 MiB scoped default.
        return 8 << 20, 32 << 20
    # v5e (16 MiB scoped default) / v5p / v4 / unknown: conservative.
    return 6 << 20, 24 << 20


def _pick_hw_chunk(hw, itemsize, sub_mult, budget):
    """Lane-dense chunk width.  Full-dim (any width) when HW < 128, otherwise a
    large multiple of 128 sized so a minimum-height block fits the budget."""
    if hw < 128:
        return hw                                   # full-dim block: always legal
    max_lane = max(budget // (sub_mult * itemsize), 128)
    cap = max((max_lane // 128) * 128, 128)
    return min(_round_up(hw, 128), cap)


def _pick_rows_block(rows, hw_chunk, itemsize, sub_mult, budget):
    """Rows per block: multiple of the (dtype-aware) sublane packing, sized to the
    VMEM budget, capped so the parallel axis has >=2 blocks when rows allow."""
    max_rows = max(budget // max(hw_chunk * itemsize, 1), 1)
    rows_blk = max((max_rows // sub_mult) * sub_mult, sub_mult)
    if rows >= 2 * sub_mult:
        # >=2 row blocks so the "parallel" axis can shard across TCs (v7x megacore).
        half = _round_up(-(-rows // 2), sub_mult)
        rows_blk = min(rows_blk, half)
    if rows_blk >= rows:
        rows_blk = rows                             # full-dim block: always legal
    return rows_blk


# ---------------------------------------------------------------------------
# Wrapper.
# ---------------------------------------------------------------------------
def attention2d_forward(x_nchw, w1, b1, w2, b2, *, block_budget_bytes=None):
    """x_nchw: (B, C, H, W); w1: (K, C, 1, 1); b1: (K,); w2: (K, K, 1, 1); b2: (K,)."""
    B, C, H, W = x_nchw.shape
    K = w1.shape[0]
    HW = H * W
    R = B * C

    budget, vmem_limit = _device_budgets()
    if block_budget_bytes is not None:          # test hook / manual override
        budget = int(block_budget_bytes)

    # ---- Stage 1: pooled means -> (B*C, 1) f32 -----------------------------
    x2d = x_nchw.reshape(R, HW)                 # native dtype; no pad, no copy
    itemsize = x2d.dtype.itemsize
    sub_mult = {4: 8, 2: 16, 1: 32}.get(itemsize, 8)

    hw_chunk = _pick_hw_chunk(HW, itemsize, sub_mult, budget)
    rows_blk = _pick_rows_block(R, hw_chunk, itemsize, sub_mult, budget)
    grid = (pl.cdiv(R, rows_blk), pl.cdiv(HW, hw_chunk))
    mask_tail = (HW % hw_chunk) != 0            # padded columns in the last chunk
    acc_w = 128 if hw_chunk > 128 else hw_chunk  # hw_chunk % 128 == 0 when > 128

    kernel = functools.partial(
        _pool_mean_kernel, hw=HW, hw_chunk=hw_chunk, acc_w=acc_w,
        inv_hw=1.0 / float(HW), mask_tail=mask_tail)

    pooled = pl.pallas_call(
        kernel,
        out_shape=jax.ShapeDtypeStruct((R, 1), jnp.float32),
        grid_spec=pltpu.PrefetchScalarGridSpec(
            num_scalar_prefetch=0,
            grid=grid,
            in_specs=[pl.BlockSpec((rows_blk, hw_chunk), lambda i, k: (i, k))],
            out_specs=pl.BlockSpec((rows_blk, 1), lambda i, k: (i, 0)),
            scratch_shapes=[pltpu.VMEM((rows_blk, acc_w), jnp.float32)]),
        compiler_params=pltpu.CompilerParams(
            dimension_semantics=("parallel", "arbitrary"),
            vmem_limit_bytes=vmem_limit),
        cost_estimate=pl.CostEstimate(
            flops=R * HW,
            transcendentals=0,
            bytes_accessed=R * HW * itemsize + R * 4),
    )(x2d)

    # ---- Stage 2: fc1 + ReLU + fc2 + softmax (everything fits in VMEM) -----
    pooled_bc = pooled.reshape(B, C)
    w1_t = jnp.transpose(w1.reshape(K, C)).astype(jnp.float32)     # (C, K)
    w2_t = jnp.transpose(w2.reshape(K, K)).astype(jnp.float32)     # (K, K)
    b1_2d = b1.reshape(1, K).astype(jnp.float32)
    b2_2d = b2.reshape(1, K).astype(jnp.float32)

    vmem = pl.BlockSpec(memory_space=pltpu.MemorySpace.VMEM)
    out = pl.pallas_call(
        _fc_softmax_kernel,
        out_shape=jax.ShapeDtypeStruct((B, K), jnp.float32),
        in_specs=[vmem, vmem, vmem, vmem, vmem],
        out_specs=vmem,
    )(pooled_bc, w1_t, b1_2d, w2_t, b2_2d)
    return out


# ---------------------------------------------------------------------------
# Pure-JAX reference.
# ---------------------------------------------------------------------------
def _reference(x_nchw, w1, b1, w2, b2):
    B, C, H, W = x_nchw.shape
    K = w1.shape[0]
    pooled = jnp.mean(x_nchw.astype(jnp.float32), axis=(2, 3))     # (B, C)
    h = jnp.maximum(pooled @ w1.reshape(K, C).T.astype(jnp.float32) + b1, 0.0)
    logits = h @ w2.reshape(K, K).T.astype(jnp.float32) + b2
    return jax.nn.softmax(logits, axis=1)


def _make_params(key, C, K):
    kw1, kb1, kw2, kb2 = jax.random.split(key, 4)
    w1 = jax.random.normal(kw1, (K, C, 1, 1), dtype=jnp.float32) * 0.5
    b1 = jax.random.normal(kb1, (K,), dtype=jnp.float32) * 0.1
    w2 = jax.random.normal(kw2, (K, K, 1, 1), dtype=jnp.float32) * 0.5
    b2 = jax.random.normal(kb2, (K,), dtype=jnp.float32) * 0.1
    return w1, b1, w2, b2


if __name__ == "__main__":
    key = jax.random.PRNGKey(0)
    kx, kp = jax.random.split(key)

    # Small shapes consistent with the module: in_planes=4, K=4, spatial=16.
    B, C, H, W, K = 2, 4, 16, 16, 4
    x = jax.random.normal(kx, (B, C, H, W), dtype=jnp.float32)
    w1, b1, w2, b2 = _make_params(kp, C, K)

    out = attention2d_forward(x, w1, b1, w2, b2)
    jax.block_until_ready(out)
    ref = _reference(x, w1, b1, w2, b2)
    assert out.shape == (B, K)
    assert jnp.allclose(out, ref, atol=1e-5, rtol=1e-5), (out, ref)
    assert jnp.allclose(jnp.sum(out, axis=1), 1.0, atol=1e-5)

    # Ragged H*W handled in-kernel via column masking (no wrapper pad): 17*17=289.
    x_e = jax.random.normal(kx, (B, C, 17, 17), dtype=jnp.float32)
    o_e = attention2d_forward(x_e, w1, b1, w2, b2)
    jax.block_until_ready(o_e)
    assert jnp.allclose(o_e, _reference(x_e, w1, b1, w2, b2), atol=1e-5, rtol=1e-5)

    # Force the multi-chunk reduction grid + tail mask by shrinking the block
    # budget: 48*48=2304 -> chunks of 512 -> grid_k=5, last chunk half-padded.
    x_c = jax.random.normal(kx, (B, C, 48, 48), dtype=jnp.float32)
    o_c = attention2d_forward(x_c, w1, b1, w2, b2, block_budget_bytes=16 << 10)
    jax.block_until_ready(o_c)
    assert jnp.allclose(o_c, _reference(x_c, w1, b1, w2, b2), atol=1e-5, rtol=1e-5)

    # Partial last row block (R=21 not a multiple of 8), >=2 parallel row
    # blocks, and the small-H*W (<128 lanes) full-dim chunk path.
    B2, C2, H2, W2 = 3, 7, 9, 11
    w1b, b1b, w2b, b2b = _make_params(kp, C2, K)
    x_r = jax.random.normal(kx, (B2, C2, H2, W2), dtype=jnp.float32)
    o_r = attention2d_forward(x_r, w1b, b1b, w2b, b2b)
    jax.block_until_ready(o_r)
    assert jnp.allclose(o_r, _reference(x_r, w1b, b1b, w2b, b2b),
                        atol=1e-5, rtol=1e-5)

    # bf16 activations: dtype-aware sublane packing + in-kernel upcast.
    x_b = jax.random.normal(kx, (B, C, H, W), dtype=jnp.bfloat16)
    o_b = attention2d_forward(x_b, w1, b1, w2, b2)
    jax.block_until_ready(o_b)
    assert jnp.allclose(o_b, _reference(x_b, w1, b1, w2, b2), atol=1e-5, rtol=1e-5)

    print("KERNEL_OK")
</pallas_src>

<mosaic_0001>
module attributes {stable_mosaic.version = 11 : i64} {
  func.func @_pool_mean_kernel(%arg0: i32, %arg1: i32, %arg2: memref<8x256xf32, #tpu.memory_space<vmem>>, %arg3: memref<8x1xf32, #tpu.memory_space<vmem>>, %arg4: memref<8x128xf32, #tpu.memory_space<vmem>>) attributes {dimension_semantics = [#tpu.dimension_semantics<parallel>, #tpu.dimension_semantics<arbitrary>], iteration_bounds = array<i64: 1, 1>, scalar_prefetch = 0 : i64, scratch_operands = 1 : i64, tpu.core_type = #tpu.core_type<tc>, window_params = [{transform_indices = @transform_0, window_bounds = array<i64: 8, 256>}, {transform_indices = @transform_1, window_bounds = array<i64: 8, 1>}]} {
    %c0_i32 = arith.constant 0 : i32
    %0 = arith.cmpi eq, %arg1, %c0_i32 : i32
    %1 = arith.extui %0 : i1 to i32
    %c0_i32_0 = arith.constant 0 : i32
    %2 = arith.cmpi ne, %1, %c0_i32_0 : i32
    scf.if %2 {
      %cst = arith.constant 0.000000e+00 : f32
      %13 = vector.broadcast %cst : f32 to vector<8x128xf32>
      %c0_8 = arith.constant 0 : index
      %c0_9 = arith.constant 0 : index
      %14 = vector.load %arg4[%c0_8, %c0_9] : memref<8x128xf32, #tpu.memory_space<vmem>>, vector<8x128xf32>
      tpu.vector_store %arg4[%c0_8, %c0_9], %13 {strides = array<i32>} : memref<8x128xf32, #tpu.memory_space<vmem>>, vector<8x128xf32>,
    } else {
    }
    %c0 = arith.constant 0 : index
    %c0_1 = arith.constant 0 : index
    %3 = vector.load %arg2[%c0, %c0_1] : memref<8x256xf32, #tpu.memory_space<vmem>>, vector<8x256xf32>
    %4 = vector.extract_strided_slice %3 {offsets = [0, 0], sizes = [8, 128], strides = [1, 1]} : vector<8x256xf32> to vector<8x128xf32>
    %5 = vector.extract_strided_slice %3 {offsets = [0, 128], sizes = [8, 128], strides = [1, 1]} : vector<8x256xf32> to vector<8x128xf32>
    %6 = arith.addf %4, %5 : vector<8x128xf32>
    %c0_2 = arith.constant 0 : index
    %c0_3 = arith.constant 0 : index
    %7 = vector.load %arg4[%c0_2, %c0_3] : memref<8x128xf32, #tpu.memory_space<vmem>>, vector<8x128xf32>
    %8 = arith.addf %7, %6 : vector<8x128xf32>
    %c0_4 = arith.constant 0 : index
    %c0_5 = arith.constant 0 : index
    %9 = vector.load %arg4[%c0_4, %c0_5] : memref<8x128xf32, #tpu.memory_space<vmem>>, vector<8x128xf32>
    tpu.vector_store %arg4[%c0_4, %c0_5], %8 {strides = array<i32>} : memref<8x128xf32, #tpu.memory_space<vmem>>, vector<8x128xf32>,
    %c0_i32_6 = arith.constant 0 : i32
    %10 = arith.cmpi eq, %arg1, %c0_i32_6 : i32
    %11 = arith.extui %10 : i1 to i32
    %c0_i32_7 = arith.constant 0 : i32
    %12 = arith.cmpi ne, %11, %c0_i32_7 : i32
    scf.if %12 {
      %c0_8 = arith.constant 0 : index
      %c0_9 = arith.constant 0 : index
      %13 = vector.load %arg4[%c0_8, %c0_9] : memref<8x128xf32, #tpu.memory_space<vmem>>, vector<8x128xf32>
      %cst = arith.constant dense<0.000000e+00> : vector<8xf32>
      %14 = vector.multi_reduction <add>, %13, %cst [1] : vector<8x128xf32> to vector<8xf32>
      %15 = vector.shape_cast %14 : vector<8xf32> to vector<8x1xf32>
      %cst_10 = arith.constant 3.906250e-03 : f32
      %16 = vector.broadcast %cst_10 : f32 to vector<8x1xf32>
      %17 = arith.mulf %15, %16 : vector<8x1xf32>
      %c0_11 = arith.constant 0 : index
      %c0_12 = arith.constant 0 : index
      %18 = vector.load %arg3[%c0_11, %c0_12] : memref<8x1xf32, #tpu.memory_space<vmem>>, vector<8x1xf32>
      tpu.vector_store %arg3[%c0_11, %c0_12], %17 {strides = array<i32>} : memref<8x1xf32, #tpu.memory_space<vmem>>, vector<8x1xf32>,
    } else {
    }
    return
  }
  func.func @transform_0(%arg0: i32, %arg1: i32) -> (i32, i32) {
    %c0_i32 = arith.constant 0 : i32
    return %arg0, %arg1 : i32, i32
  }
  func.func @transform_1(%arg0: i32, %arg1: i32) -> (i32, i32) {
    %c0_i32 = arith.constant 0 : i32
    %c0_i32_0 = arith.constant 0 : i32
    return %arg0, %c0_i32 : i32, i32
  }
}

</mosaic_0001>

<bundles_post_ra>
// kernel: tpu_custom_call.1
= control target key start
LH: loop header
LB: loop body
LE: loop exit
PB: predicated region body
PF: predicated region fallthrough
CT: control target
= control target key end

     0   :  { %6 = vsyncpa [#allocation4], 0  ;;  %s68_s6 = smov [#allocation3]   ;;  %s85_s0 = inlined_call_operand.hbm [shape: f32[8,256], index: 0, kind: input, shape index: {}]   ;;  %s86_s1 = inlined_call_operand.vmem [shape: f32[8,1], index: 1, kind: output, shape index: {}]  }
   0x1   :  { %s13_s7 = sshll.u32 %s68_s6, 4  ;;  %s14_s7 = int_to_ptr.vmem [resolvable:$true] %s13_s7 }
   0x2   :  { %s54_s8 = scalar_lea.vmem %s14_s7, 256  ;;  %p59_p1 = scmp.lt.s32.totalorder %s14_s7, %s14_s7 }
   0x3   :  { %p55_p0 = scmp.ne.s32.totalorder %s14_s7, %s54_s8  ;;  %p60_p2 = scmp.lt.s32.totalorder %s54_s8, %s54_s8 }
   0x5   :  { %p61_p3 = por %p60_p2, %p59_p1 }
   0x7   :  { %p62_p4 = pnand %p61_p3, %p55_p0 }
   0x9   :  { %65 = shalt.err (!%p62_p4)
}
   0xa   :  { %16 = dma.hbm_to_vmem [thread:$0]  %s85_s0, 256, %s14_s7, [#allocation4]  }
   0xb   :  { %66 = dma.done.wait [#allocation4], 256  }
   0xc   :  { %67 = vsyncadd [#allocation4], 4294967040  ;;  %v25_v0 = vld [vmem:[#allocation3] sm:$0xff]  ;;  %v26_v1 = vld [vmem:[#allocation3 + $0x8] sm:$0xff]  ;;  %vm38_vm0 = vcmask 7168  }
   0xd   :  { %v27_v2 = vadd.f32 %v26_v1, %v25_v0 }
   0xf   :  { %35 = vadd.xlane.f32.xlu0 %v27_v2 }
  0x98   :  { %v36_v3 = vpop.xlane.xlu0 %35 }
  0x99   :  { %v37_v4 = vmul.f32 0.00390625, %v36_v3 }
  0x9b   :  { %39 = vst.msk [vmem:[%s86_s1] sm:$0xff] %vm38_vm0, %v37_v4 }
  0x9c   :  { %44 = vsyncpa [#allocation4], 1 }

</bundles_post_ra>
